<compile_context>
chip_gen: v6e
topology: v6e:2x2x1
jax: 0.10.0
libtpu: 0.0.40
codegen_flags: <defaults>
</compile_context>

<pallas_src>
import jax
import jax.numpy as jnp
from jax.experimental import pallas as pl
from jax.experimental.pallas import tpu as pltpu


def _make_nll_kernel(rows_total, ts):
    """Builds the per-block kernel.

    Block layouts (pixels lane-dense, channels on a leading reduce axis):
      4-D path: logits (1, C, TS, 128), tgt/nll (1, 1, TS, 128)
      3-D path: logits (1, C, HW),      tgt/nll (1, 1, HW)     (rows_total None)
    psum block is always (1, 1, 8, 128): the block's NLL sum broadcast across
    one dense vreg (keeps the tiny side-output (8,128)-aligned).
    """
    need_row_mask = (rows_total is not None and ts is not None
                     and rows_total % ts != 0)

    def kernel(logits_ref, tgt_ref, nll_ref, psum_ref):
        x = logits_ref[...]                                # native dtype (bf16 stays bf16)
        # Max and target-pick are exact in the input dtype; only exp/sum/log
        # run in f32 (v6e/v7x have bf16 VALU; Mosaic promotes on v5e).
        m = jnp.max(x, axis=1, keepdims=True)              # per-pixel max over C
        m32 = m.astype(jnp.float32)
        z = x.astype(jnp.float32) - m32
        lse = jnp.log(jnp.sum(jnp.exp(z), axis=1, keepdims=True))

        ch = jax.lax.broadcasted_iota(jnp.int32, x.shape, 1)          # channel ids
        picked = jnp.sum(jnp.where(ch == tgt_ref[...], x, jnp.zeros_like(x)),
                         axis=1, keepdims=True).astype(jnp.float32)   # x[target]

        nll = lse + m32 - picked                           # -log p[target]
        nll_ref[...] = nll

        if need_row_mask:
            # Last pixel tile is padded past `rows_total`; garbage rows must not
            # reach the partial sum (their nll stores are masked by Pallas).
            w = pl.program_id(1)
            row = jax.lax.broadcasted_iota(jnp.int32, nll.shape, 2)
            s = jnp.sum(jnp.where(row < rows_total - w * ts, nll, 0.0))
        else:
            s = jnp.sum(nll)
        psum_ref[...] = jnp.full(psum_ref.shape, s, dtype=jnp.float32)

    return kernel


def _pick_ts(rows, C, itemsize):
    """Pixel rows (of 128 lanes) per block: ~512 KiB of raw logits, multiple of 8.

    Sized so that double-buffered inputs/outputs plus the ~3x f32 in-kernel
    temporaries stay a few MiB -- well inside default scoped VMEM on v5e/v6e
    and the 32 MiB scoped budget on v7x.
    """
    budget_bytes = 512 * 1024
    ts = budget_bytes // (max(C, 1) * 128 * itemsize)
    ts = (ts // 8) * 8
    if rows >= 32:
        # Keep >= ~4 pixel tiles so v7x's two TensorCores and the DMA pipeline
        # always have work to overlap.
        ts = min(ts, ((rows // 4) // 8) * 8)
    ts = max(ts, 8)
    return rows if ts >= rows else ts


def shape_aware_cross_entropy_loss(x, logits, targets, *, ts=None):
    """out[n,h,w] = NLL[n,h,w] * mean(NLL)  (== -logp.gather(1,t).sum(1) * CE).

    Args:
      x:       unused (kept for signature parity with the PyTorch module).
      logits:  (N, C, H, W) float (f32 or bf16).
      targets: (N, 1, H, W) integer class indices in [0, C).
      ts:      optional pixel-row tile override (testing / tuning).
    Returns:
      (N, H, W) float32.
    """
    del x
    N, C, H, W = logits.shape
    assert targets.shape == (N, 1, H, W)
    HW = H * W
    itemsize = jnp.dtype(logits.dtype).itemsize
    tgt = targets.astype(jnp.int32)

    if HW % 128 == 0:
        rows = HW // 128
        if ts is None:
            ts = _pick_ts(rows, C, itemsize)
        num_wt = pl.cdiv(rows, ts)
        logits_r = logits.reshape(N, C, rows, 128)        # free reshape, no transpose
        tgt_r = tgt.reshape(N, 1, rows, 128)
        in_specs = [
            pl.BlockSpec((1, C, ts, 128), lambda n, w: (n, 0, w, 0)),
            pl.BlockSpec((1, 1, ts, 128), lambda n, w: (n, 0, w, 0)),
        ]
        nll_shape = (N, 1, rows, 128)
        nll_spec = pl.BlockSpec((1, 1, ts, 128), lambda n, w: (n, 0, w, 0))
        kernel = _make_nll_kernel(rows, ts)
    else:
        # Fallback: pixels entirely on lanes (full extent), single pixel tile.
        num_wt = 1
        logits_r = logits.reshape(N, C, HW)
        tgt_r = tgt.reshape(N, 1, HW)
        in_specs = [
            pl.BlockSpec((1, C, HW), lambda n, w: (n, 0, 0)),
            pl.BlockSpec((1, 1, HW), lambda n, w: (n, 0, 0)),
        ]
        nll_shape = (N, 1, HW)
        nll_spec = pl.BlockSpec((1, 1, HW), lambda n, w: (n, 0, 0))
        kernel = _make_nll_kernel(None, None)

    nll_r, psum = pl.pallas_call(
        kernel,
        grid=(N, num_wt),
        in_specs=in_specs,
        out_specs=(
            nll_spec,
            pl.BlockSpec((1, 1, 8, 128), lambda n, w: (n, w, 0, 0)),
        ),
        out_shape=(
            jax.ShapeDtypeStruct(nll_shape, jnp.float32),
            jax.ShapeDtypeStruct((N, num_wt, 8, 128), jnp.float32),
        ),
        compiler_params=pltpu.CompilerParams(
            dimension_semantics=("parallel", "parallel")),
    )(logits_r, tgt_r)

    nll = nll_r.reshape(N, H, W)
    # Mean NLL from the in-kernel partial sums (no second full HBM pass).
    ce = jnp.sum(psum[:, :, 0, 0]) / (N * H * W)
    return nll * ce


def _reference(logits, targets):
    """Plain-JAX reference mirroring the PyTorch module."""
    logp = jax.nn.log_softmax(logits.astype(jnp.float32), axis=1)    # (N, C, H, W)
    gathered = jnp.take_along_axis(logp, targets.astype(jnp.int32), axis=1)
    per_pix = -jnp.sum(gathered, axis=1)                             # (N, H, W)
    return per_pix * jnp.mean(per_pix)


if __name__ == "__main__":
    key = jax.random.PRNGKey(0)
    k1, k2, k3 = jax.random.split(key, 3)

    N, C, H, W = 2, 4, 16, 16
    x = jax.random.normal(k1, (N, C, H, W), dtype=jnp.float32)        # unused
    logits = jax.random.normal(k2, (N, C, H, W), dtype=jnp.float32)
    targets = jax.random.randint(k3, (N, 1, H, W), 0, C, dtype=jnp.int32)

    out = jax.block_until_ready(shape_aware_cross_entropy_loss(x, logits, targets))
    ref = _reference(logits, targets)
    assert out.shape == (N, H, W)
    assert jnp.allclose(out, ref, atol=1e-4, rtol=1e-4), "mismatch vs reference"

    # Extra tiny checks: (a) row-masked partial sums on a ragged last tile,
    # (b) the 3-D fallback path (HW % 128 != 0).
    for (n2, c2, h2, w2, ts2) in ((1, 4, 16, 88, 8), (1, 5, 6, 10, None)):
        ka, kb = jax.random.split(jax.random.PRNGKey(n2 + h2), 2)
        lg = jax.random.normal(ka, (n2, c2, h2, w2), dtype=jnp.float32)
        tg = jax.random.randint(kb, (n2, 1, h2, w2), 0, c2, dtype=jnp.int32)
        got = jax.block_until_ready(
            shape_aware_cross_entropy_loss(None, lg, tg, ts=ts2))
        assert jnp.allclose(got, _reference(lg, tg), atol=1e-4, rtol=1e-4), \
            f"mismatch vs reference for shape {(n2, c2, h2, w2)}"

    print("KERNEL_OK")
</pallas_src>

<mosaic_0001>
module attributes {stable_mosaic.version = 11 : i64} {
  func.func @kernel(%arg0: i32, %arg1: i32, %arg2: memref<1x4x2x128xf32, #tpu.memory_space<vmem>>, %arg3: memref<1x1x2x128xi32, #tpu.memory_space<vmem>>, %arg4: memref<1x1x2x128xf32, #tpu.memory_space<vmem>>, %arg5: memref<1x1x8x128xf32, #tpu.memory_space<vmem>>) attributes {dimension_semantics = [#tpu.dimension_semantics<parallel>, #tpu.dimension_semantics<parallel>], iteration_bounds = array<i64: 2, 1>, scalar_prefetch = 0 : i64, scratch_operands = 0 : i64, tpu.core_type = #tpu.core_type<tc>, window_params = [{transform_indices = @transform_0, window_bounds = array<i64: 1, 4, 2, 128>}, {transform_indices = @transform_1, window_bounds = array<i64: 1, 1, 2, 128>}, {transform_indices = @transform_2, window_bounds = array<i64: 1, 1, 2, 128>}, {transform_indices = @transform_3, window_bounds = array<i64: 1, 1, 8, 128>}]} {
    %c0 = arith.constant 0 : index
    %c0_0 = arith.constant 0 : index
    %c0_1 = arith.constant 0 : index
    %c0_2 = arith.constant 0 : index
    %0 = vector.load %arg2[%c0, %c0_0, %c0_1, %c0_2] : memref<1x4x2x128xf32, #tpu.memory_space<vmem>>, vector<1x4x2x128xf32>
    %cst = arith.constant dense<0xFF800000> : vector<1x2x128xf32>
    %1 = vector.multi_reduction <maximumf>, %0, %cst [1] : vector<1x4x2x128xf32> to vector<1x2x128xf32>
    %2 = vector.shape_cast %1 : vector<1x2x128xf32> to vector<1x1x2x128xf32>
    %3 = vector.broadcast %2 : vector<1x1x2x128xf32> to vector<1x4x2x128xf32>
    %4 = arith.subf %0, %3 : vector<1x4x2x128xf32>
    %5 = math.exp %4 : vector<1x4x2x128xf32>
    %cst_3 = arith.constant dense<0.000000e+00> : vector<1x2x128xf32>
    %6 = vector.multi_reduction <add>, %5, %cst_3 [1] : vector<1x4x2x128xf32> to vector<1x2x128xf32>
    %7 = vector.shape_cast %6 : vector<1x2x128xf32> to vector<1x1x2x128xf32>
    %8 = math.log %7 : vector<1x1x2x128xf32>
    %9 = tpu.iota {dimensions = array<i32: 1>} : vector<1x4x2x128xi32>
    %c0_4 = arith.constant 0 : index
    %c0_5 = arith.constant 0 : index
    %c0_6 = arith.constant 0 : index
    %c0_7 = arith.constant 0 : index
    %10 = vector.load %arg3[%c0_4, %c0_5, %c0_6, %c0_7] : memref<1x1x2x128xi32, #tpu.memory_space<vmem>>, vector<1x1x2x128xi32>
    %11 = vector.broadcast %10 : vector<1x1x2x128xi32> to vector<1x4x2x128xi32>
    %12 = arith.cmpi eq, %9, %11 : vector<1x4x2x128xi32>
    %cst_8 = arith.constant 0.000000e+00 : f32
    %13 = vector.broadcast %cst_8 : f32 to vector<1x4x2x128xf32>
    %14 = arith.select %12, %0, %13 : vector<1x4x2x128xi1>, vector<1x4x2x128xf32>
    %cst_9 = arith.constant dense<0.000000e+00> : vector<1x2x128xf32>
    %15 = vector.multi_reduction <add>, %14, %cst_9 [1] : vector<1x4x2x128xf32> to vector<1x2x128xf32>
    %16 = vector.shape_cast %15 : vector<1x2x128xf32> to vector<1x1x2x128xf32>
    %17 = arith.addf %8, %2 : vector<1x1x2x128xf32>
    %18 = arith.subf %17, %16 : vector<1x1x2x128xf32>
    %c0_10 = arith.constant 0 : index
    %c0_11 = arith.constant 0 : index
    %c0_12 = arith.constant 0 : index
    %c0_13 = arith.constant 0 : index
    %19 = vector.load %arg4[%c0_10, %c0_11, %c0_12, %c0_13] : memref<1x1x2x128xf32, #tpu.memory_space<vmem>>, vector<1x1x2x128xf32>
    tpu.vector_store %arg4[%c0_10, %c0_11, %c0_12, %c0_13], %18 {strides = array<i32>} : memref<1x1x2x128xf32, #tpu.memory_space<vmem>>, vector<1x1x2x128xf32>,
    %20 = vector.shape_cast %18 : vector<1x1x2x128xf32> to vector<1x1x1x2x128xf32>
    %cst_14 = arith.constant dense<0.000000e+00> : vector<1xf32>
    %21 = vector.multi_reduction <add>, %20, %cst_14 [1, 2, 3, 4] : vector<1x1x1x2x128xf32> to vector<1xf32>
    %22 = vector.shape_cast %21 : vector<1xf32> to vector<1x1x1x1x1xf32>
    %23 = vector.extract %22[0, 0, 0, 0, 0] : f32 from vector<1x1x1x1x1xf32>
    %24 = vector.broadcast %23 : f32 to vector<1x1x8x128xf32>
    %c0_15 = arith.constant 0 : index
    %c0_16 = arith.constant 0 : index
    %c0_17 = arith.constant 0 : index
    %c0_18 = arith.constant 0 : index
    %25 = vector.load %arg5[%c0_15, %c0_16, %c0_17, %c0_18] : memref<1x1x8x128xf32, #tpu.memory_space<vmem>>, vector<1x1x8x128xf32>
    tpu.vector_store %arg5[%c0_15, %c0_16, %c0_17, %c0_18], %24 {strides = array<i32>} : memref<1x1x8x128xf32, #tpu.memory_space<vmem>>, vector<1x1x8x128xf32>,
    return
  }
  func.func @transform_0(%arg0: i32, %arg1: i32) -> (i32, i32, i32, i32) {
    %c0_i32 = arith.constant 0 : i32
    %c0_i32_0 = arith.constant 0 : i32
    %c0_i32_1 = arith.constant 0 : i32
    return %arg0, %c0_i32, %arg1, %c0_i32_0 : i32, i32, i32, i32
  }
  func.func @transform_1(%arg0: i32, %arg1: i32) -> (i32, i32, i32, i32) {
    %c0_i32 = arith.constant 0 : i32
    %c0_i32_0 = arith.constant 0 : i32
    %c0_i32_1 = arith.constant 0 : i32
    return %arg0, %c0_i32, %arg1, %c0_i32_0 : i32, i32, i32, i32
  }
  func.func @transform_2(%arg0: i32, %arg1: i32) -> (i32, i32, i32, i32) {
    %c0_i32 = arith.constant 0 : i32
    %c0_i32_0 = arith.constant 0 : i32
    %c0_i32_1 = arith.constant 0 : i32
    return %arg0, %c0_i32, %arg1, %c0_i32_0 : i32, i32, i32, i32
  }
  func.func @transform_3(%arg0: i32, %arg1: i32) -> (i32, i32, i32, i32) {
    %c0_i32 = arith.constant 0 : i32
    %c0_i32_0 = arith.constant 0 : i32
    %c0_i32_1 = arith.constant 0 : i32
    return %arg0, %arg1, %c0_i32, %c0_i32_0 : i32, i32, i32, i32
  }
}

</mosaic_0001>

<bundles_post_ra>
// kernel: tpu_custom_call.1
= control target key start
LH: loop header
LB: loop body
LE: loop exit
PB: predicated region body
PF: predicated region fallthrough
CT: control target
= control target key end

     0   :  { %s1009_s0 = inlined_call_operand.hbm [shape: f32[2,4,2,128], index: 0, kind: input, shape index: {}]   ;;  %s1010_s1 = inlined_call_operand.hbm [shape: s32[2,1,2,128], index: 1, kind: input, shape index: {}]   ;;  %s1011_s2 = inlined_call_operand.hbm [shape: f32[2,1,2,128], index: 2, kind: output, shape index: {0}]   ;;  %s1012_s3 = inlined_call_operand.hbm [shape: f32[2,1,8,128], index: 3, kind: output, shape index: {1}]  }
   0x1   :  { %1013 = sst [smem:[#allocation14_spill]] %s1009_s0 }
   0x2   :  { %9 = vsyncpa [#allocation3], 0 }
   0x3   :  { %11 = vsyncpa [#allocation3 + $0x1], 0 }
   0x4   :  { %12 = vsyncpa [#allocation6], 0 }
   0x5   :  { %14 = vsyncpa [#allocation6 + $0x1], 0 }
   0x6   :  { %15 = vsyncpa [#allocation4], 0 }
   0x7   :  { %17 = vsyncpa [#allocation4 + $0x1], 0 }
   0x8   :  { %18 = vsyncpa [#allocation9], 0 }
   0x9   :  { %20 = vsyncpa [#allocation9 + $0x1], 0  ;;  %s800_s12 = smov 0   ;;  %s802_s13 = smov 0  }
   0xa   :  { %s804_s14 = smov 0   ;;  %s806_s15 = smov 0  }
   0xb   :  { %s808_s16 = smov 0   ;;  %s810_s17 = smov 0  }
   0xc LB: > { %s495_s18 = sadd.s32 4294967295, %s772_s17   ;;  %s496_s19 = sadd.s32 4294967294, %s772_s17   ;;  %s772_s17 = sphi %s810_s17, %s26_s17   ;;  %s768_s16 = sphi %s808_s16, %s1026_s16   ;;  %s764_s15 = sphi %s806_s15, %s1025_s15   ;;  %s760_s14 = sphi %s804_s14, %s1024_s14   ;;  %s756_s13 = sphi %s802_s13, %s1023_s13   ;;  %s752_s12 = sphi %s800_s12, %s1022_s12  }
   0xd   : > { %s38_s20 = sadd.s32 1, %s768_s16  ;;  %s47_s21 = sadd.s32 1, %s760_s14 }
   0xe   : > { %p40_p0 = scmp.ge.s32.totalorder %s38_s20, 2  ;;  %p54_p1 = scmp.ne.s32.totalorder %s760_s14, %s756_s13 }
   0xf   : > { %p55_p2 = scmp.eq.s32.totalorder %s772_s17, 0  ;;  %p60_p3 = scmp.ne.s32.totalorder %s756_s13, %s752_s12 }
  0x10   : > { %s1028_s20 = smov (%p40_p0, %s38_s20), 0  ;;  %p61_p5 = scmp.eq.s32.totalorder %s495_s18, 0 }
  0x11   : > { %p841_p4 = por %p55_p2, %p54_p1  ;;  %s42_s23 = ssub.s32 %s768_s16, %s1028_s20 }
  0x12   : > { %p114_p6 = scmp.eq.s32.totalorder %s495_s18, 1  ;;  %p45_p7 = scmp.eq.s32.totalorder %s42_s23, 0 }
  0x13   : > { %p847_p8 = por %p61_p5, %p60_p3  ;;  %p120_p10 = scmp.eq.s32.totalorder %s496_s19, 1 }
  0x14   : > { %p851_p9 = por %p114_p6, %p54_p1  ;;  %p540_p13 = scmp.lt.s32.totalorder %s772_s17, 2 }
  0x15   : > { %s856_s26 = scalar_select %p45_p7, %s760_s14, %s47_s21  }
  0x16   : > { %p858_p11 = por %p120_p10, %p60_p3  ;;  %s865_s28 = sand.u32 1, %s760_s14  }
  0x17   : > { %s499_s29 = sshll.u32 %s865_s28, 3  ;;  %s515_s30 = sshll.u32 %s768_s16, 7 }
  0x18   : > { %s1018_s0 = sld [smem:[#allocation14_spill]]  ;;  %s172_s7 = scalar_lea.vmem [#allocation2], %s499_s29 }
  0x19   : > { %s180_s8 = sshll.u32 %s172_s7, 4  ;;  %p874_p0 = pnand %p540_p13, %p841_p4  ;;  %s181_s8 = int_to_ptr.vmem [resolvable:$true] %s180_s8 }
  0x1a   : > { %p504_p1 = scmp.ge.s32.totalorder %s772_s17, 1  ;;  %s169_s10 = scalar_lea.sflag [#allocation3], %s865_s28 }
  0x1b   : > { %p604_p2 = pneg %p874_p0  ;;  %s615_s11 = scalar_lea.vmem %s181_s8, 128 }
  0x1c   : > { %p616_p3 = scmp.ne.s32.totalorder %s181_s8, %s615_s11  ;;  %s774_s18 = smov [#allocation2]  }
  0x1d   : > { %s620_s19 = sshll.u32 %s774_s18, 4  ;;  %s621_s19 = int_to_ptr.vmem [resolvable:$false] %s620_s19 }
  0x1e   : > { %s179_s6 = scalar_lea.hbm %s1018_s0, %s515_s30  ;;  %p618_p5 = pnand %p616_p3, %p604_p2 }
  0x1f   : > { %s622_s21 = scalar_lea.vmem %s621_s19, 256  ;;  %p623_p4 = scmp.lt.s32.totalorder %s181_s8, %s621_s19 }
  0x20   : > { %p619_p6 = pneg %p618_p5  ;;  %p624_p7 = scmp.lt.s32.totalorder %s622_s21, %s615_s11 }
  0x22   : > { %p625_p10 = por %p624_p7, %p623_p4 }
  0x24   : > { %p626_p13 = pnand %p625_p10, %p619_p6 }
  0x26   : > { %629 = shalt.err (!%p626_p13)
}
  0x27   : > { %s775_s22 = smov 32   ;;  %s776_s23 = smov 2  }
  0x28   : > { %529 = dma.hbm_to_vmem [thread:$0]  (!%p874_p0), %s179_s6, 128, %s181_s8, %s169_s10, %s775_s22, %s775_s22, %s776_s23  }
  0x29   : > { %p207_p3 = scmp.lt.s32.totalorder %s772_s17, 3  ;;  %s502_s29 = sshll.u32 %s865_s28, 1 }
  0x2a   : > { %s503_s30 = sshll.u32 %s768_s16, 5  ;;  %s194_s18 = scalar_lea.vmem [#allocation5], %s502_s29 }
  0x2b   : > { %p892_p5 = pnand %p504_p1, %p207_p3  ;;  %s200_s11 = scalar_lea.hbm %s1010_s1, %s503_s30 }
  0x2c   : > { %s202_s19 = sshll.u32 %s194_s18, 4  ;;  %s191_s21 = scalar_lea.sflag [#allocation6], %s865_s28  ;;  %s203_s19 = int_to_ptr.vmem [resolvable:$true] %s202_s19 }
  0x2d   : > { %s643_s0 = scalar_lea.vmem %s203_s19, 32  ;;  %s777_s6 = smov [#allocation5]  }
  0x2e   : > { %p644_p6 = scmp.ne.s32.totalorder %s203_s19, %s643_s0  ;;  %s648_s8 = sshll.u32 %s777_s6, 4  ;;  %s649_s8 = int_to_ptr.vmem [resolvable:$false] %s648_s8 }
  0x2f   : > { %s650_s10 = scalar_lea.vmem %s649_s8, 64  ;;  %p651_p1 = scmp.lt.s32.totalorder %s203_s19, %s649_s8 }
  0x30   : > { %p646_p4 = pnand %p644_p6, %p604_p2  ;;  %p652_p10 = scmp.lt.s32.totalorder %s650_s10, %s643_s0 }
  0x32   : > { %p647_p7 = pneg %p646_p4  ;;  %p653_p13 = por %p652_p10, %p651_p1 }
  0x34   : > { %p654_p3 = pnand %p653_p13, %p647_p7 }
  0x36   : > { %657 = shalt.err (!%p654_p3)
}
  0x37   : > { %532 = dma.hbm_to_vmem [thread:$0]  (!%p874_p0), %s200_s11, 32, %s203_s19, %s191_s21  }
  0x38   : > { %211 = sbr.rel (%p892_p5) target bundleno = 333 (0x14d), region = 28  ;;  %s908_s28 = sand.u32 (!%p892_p5), 1, %s756_s13  }
  0x39   : > { %s505_s22 = sshll.u32 (!%p892_p5), %s908_s28, 3  ;;  %s214_s23 = scalar_lea.sflag (!%p892_p5), [#allocation3], %s908_s28 }
  0x3a   : > { %s217_s0 = scalar_lea.vmem (!%p892_p5), [#allocation2], %s505_s22 }
  0x3d   : > { %735 = dma.done.wait (%p847_p8), %s214_s23, 128  }
  0x3e   : > { %737 = vsyncadd (%p847_p8), %s214_s23, 4294967168  ;;  %s506_s9 = sshll.u32 %s908_s28, 1  ;;  %s223_s29 = scalar_lea.sflag [#allocation6], %s908_s28 }
  0x3f   : > { %s922_s30 = scalar_lea.vmem [#allocation5], %s506_s9 }
  0x40   : > { %739 = dma.done.wait (%p847_p8), %s223_s29, 32  }
  0x41   : > { %741 = vsyncadd (%p847_p8), %s223_s29, 4294967264  ;;  %vm263_vm0 = vcmask 1041408   ;;  %v259_v0 = vld [vmem:[%s217_s0] sm:$0x3]  ;;  %v260_v1 = vld [vmem:[%s217_s0 + $0x2] sm:$0x3] }
  0x42   : > { %v261_v2 = vld [vmem:[%s217_s0 + $0x4] sm:$0x3]  ;;  %v262_v3 = vld [vmem:[%s217_s0 + $0x6] sm:$0x3]  ;;  %v264_v4 = vsel %vm263_vm0, %v259_v0, -inf  ;;  %v265_v5 = vsel %vm263_vm0, %v260_v1, -inf }
  0x43   : > { %v266_v6 = vsel %vm263_vm0, %v261_v2, -inf  ;;  %v267_v7 = vsel %vm263_vm0, %v262_v3, -inf  ;;  %v268_v8 = vmax.f32 %v264_v4, %v265_v5  ;;  %v292_v27 = vld [vmem:[%s922_s30] sm:$0x3]  ;;  %s251_s24 = scalar_lea.vmem [#allocation7], %s506_s9  ;;  %s511_s4 = sshll.u32 %s764_s15, 5 }
  0x44   : > { %v269_v9 = vmax.f32 %v266_v6, %v267_v7  ;;  %vm293_vm1 = vcmp.eq.s32.totalorder %v292_v27, 0  ;;  %vm294_vm2 = vcmp.eq.s32.totalorder %v292_v27, 1  ;;  %vm295_vm3 = vcmp.eq.s32.totalorder %v292_v27, 2  ;;  %s341_s11 = scalar_lea.hbm %s1011_s2, %s511_s4  ;;  %s343_s18 = sshll.u32 %s251_s24, 4  ;;  %s344_s18 = int_to_ptr.vmem [resolvable:$true] %s343_s18 }
  0x45   : > { %v297_v31 = vsel %vm293_vm1, %v259_v0, 0.0  ;;  %v298_v32 = vsel %vm294_vm2, %v260_v1, 0.0  ;;  %v299_v35 = vsel %vm295_vm3, %v261_v2, 0.0  ;;  %vm296_vm4 = vcmp.eq.s32.totalorder %v292_v27, 3  ;;  %s324_s19 = scalar_lea.sflag [#allocation4], %s908_s28  ;;  %s658_s21 = scalar_lea.vmem %s344_s18, 32 }
  0x46   : > { %v270_v10 = vmax.f32 %v268_v8, %v269_v9  ;;  %v301_v33 = vsel %vm263_vm0, %v297_v31, 0.0  ;;  %v302_v34 = vsel %vm263_vm0, %v298_v32, 0.0  ;;  %v304_v37 = vsel %vm263_vm0, %v299_v35, 0.0  ;;  %p659_p8 = scmp.ne.s32.totalorder %s344_s18, %s658_s21  ;;  %s778_s6 = smov [#allocation7]  }
  0x47   : > { %v303_v36 = vadd.f32 %v302_v34, %v301_v33  ;;  %v300_v38 = vsel %vm296_vm4, %v262_v3, 0.0  ;;  %s662_s8 = sshll.u32 %s778_s6, 4  ;;  %s663_s8 = int_to_ptr.vmem [resolvable:$false] %s662_s8 }
  0x48   : > { %v271_v11 = vsub.f32 %v259_v0, %v270_v10  ;;  %v272_v12 = vsub.f32 %v260_v1, %v270_v10  ;;  %v273_v13 = vsub.f32 %v261_v2, %v270_v10  ;;  %v274_v14 = vsub.f32 %v262_v3, %v270_v10  ;;  %p660_p0 = pnand %p659_p8, %p851_p9  ;;  %s664_s10 = scalar_lea.vmem %s663_s8, 64 }
  0x49   : > { %v305_v39 = vadd.f32 %v304_v37, %v303_v36  ;;  %v306_v40 = vsel %vm263_vm0, %v300_v38, 0.0  ;;  %p665_p5 = scmp.lt.s32.totalorder %s344_s18, %s663_s8  ;;  %p666_p6 = scmp.lt.s32.totalorder %s664_s10, %s658_s21 }
  0x4a   : > { %v275_v15 = vmul.f32 1.442695, %v271_v11  ;;  %v277_v16 = vmul.f32 1.442695, %v272_v12  ;;  %v279_v17 = vmul.f32 1.442695, %v273_v13  ;;  %p661_p2 = pneg %p660_p0 }
  0x4b   : > { %v281_v18 = vmul.f32 1.442695, %v274_v14  ;;  %v307_v43 = vadd.f32 %v306_v40, %v305_v39  ;;  %p667_p4 = por %p666_p6, %p665_p5 }
  0x4c   : > { %592 = vpow2.f32 %v275_v15 }
  0x4d   : > { %594 = vpow2.f32 %v277_v16  ;;  %p668_p7 = pnand %p667_p4, %p661_p2 }
  0x4e   : > { %596 = vpow2.f32 %v279_v17 }
  0x4f   : > { %598 = vpow2.f32 %v281_v18 }
  0x59   : > { %v593_v19 = vpop.eup %592 }
  0x5a   : > { %v595_v20 = vpop.eup %594  ;;  %v283_v21 = vsel %vm263_vm0, %v593_v19, 0.0 }
  0x5b   : > { %v597_v22 = vpop.eup %596  ;;  %v284_v23 = vsel %vm263_vm0, %v595_v20, 0.0 }
  0x5c   : > { %v599_v24 = vpop.eup %598  ;;  %v285_v25 = vadd.f32 %v284_v23, %v283_v21  ;;  %v286_v26 = vsel %vm263_vm0, %v597_v22, 0.0 }
  0x5d   : > { %v288_v28 = vsel %vm263_vm0, %v599_v24, 0.0 }
  0x5e   : > { %v287_v29 = vadd.f32 %v286_v26, %v285_v25 }
  0x60   : > { %v289_v30 = vadd.f32 %v288_v28, %v287_v29 }
  0x62   : > { %600 = vlog2.f32 %v289_v30 }
  0x6f   : > { %v601_v41 = vpop.eup %600 }
  0x70   : > { %v291_v42 = vmul.f32 0.6931472, %v601_v41 }
  0x72   : > { %v308_v44 = vadd.f32 %v291_v42, %v270_v10 }
  0x74   : > { %v309_v45 = vsub.f32 %v308_v44, %v307_v43 }
  0x76   : > { %v311_v46 = vsel %vm263_vm0, %v309_v45, 0.0  ;;  %310 = vst [vmem:[%s251_s24] sm:$0x3] %v309_v45 }
  0x77   : > { %312 = vadd.xlane.f32.xlu0 %v311_v46 }
  0x78   : > { %671 = shalt.err (!%p668_p7)
}
  0x79   : > { %s672_s23 = scalar_lea.hbm %s341_s11, 32  ;;  %s676_s29 = scalar_lea.hbm %s1011_s2, 64 }
  0x7a   : > { %p673_p1 = scmp.ne.s32.totalorder %s341_s11, %s672_s23  ;;  %p677_p3 = scmp.lt.s32.totalorder %s341_s11, %s1011_s2 }
  0x7b   : > { %p678_p8 = scmp.lt.s32.totalorder %s676_s29, %s672_s23 }
  0x7c   : > { %p674_p10 = pnand %p673_p1, %p851_p9 }
  0x7d   : > { %p679_p0 = por %p678_p8, %p677_p3 }
  0x7e   : > { %p675_p13 = pneg %p674_p10 }
  0x80   : > { %p680_p12 = pnand %p679_p0, %p675_p13 }
  0x82   : > { %683 = shalt.err (!%p680_p12)
}
  0x83   : > { %522 = dma.vmem_to_hbm [thread:$0]  (%p851_p9), %s344_s18, 32, %s341_s11, %s324_s19  }
  0x84   : > { %s258_s4 = scalar_lea.vmem [#allocation8], %s505_s22  ;;  %s512_s7 = sshll.u32 %s764_s15, 7 }
  0x85   : > { %s357_s5 = sshll.u32 %s258_s4, 4  ;;  %s355_s21 = scalar_lea.hbm %s1012_s3, %s512_s7  ;;  %s964_s5 = int_to_ptr.vmem [resolvable:$true] %s357_s5 }
  0x86   : > { %s329_s6 = scalar_lea.sflag [#allocation9], %s908_s28  ;;  %s684_s8 = scalar_lea.vmem %s964_s5, 128 }
  0x87   : > { %p685_p12 = scmp.ne.s32.totalorder %s964_s5, %s684_s8  ;;  %s779_s22 = smov [#allocation8]  }
  0x88   : > { %s688_s15 = sshll.u32 %s779_s22, 4  ;;  %s689_s15 = int_to_ptr.vmem [resolvable:$false] %s688_s15 }
  0x89   : > { %p686_p2 = pnand %p685_p12, %p851_p9  ;;  %s690_s10 = scalar_lea.vmem %s689_s15, 256 }
  0x8a   : > { %p691_p6 = scmp.lt.s32.totalorder %s964_s5, %s689_s15  ;;  %p692_p4 = scmp.lt.s32.totalorder %s690_s10, %s684_s8 }
  0x8b   : > { %p687_p5 = pneg %p686_p2 }
  0x8c   : > { %p693_p7 = por %p692_p4, %p691_p6 }
  0x8e   : > { %p694_p1 = pnand %p693_p7, %p687_p5 }
 0x100   : > { %v313_v47 = vpop.xlane.xlu0 %312 }
 0x101   : > { %v314_v48 = vrot.slane %v313_v47, 4 }
 0x103   : > { %v315_v49 = vadd.f32 %v314_v48, %v313_v47 }
 0x105   : > { %v316_v50 = vrot.slane %v315_v49, 2 }
 0x107   : > { %v317_v51 = vadd.f32 %v316_v50, %v315_v49 }
 0x109   : > { %v318_v52 = vrot.slane %v317_v51, 1 }
 0x10b   : > { %v319_v53 = vadd.f32 %v318_v52, %v317_v51 }
 0x10d   : > { %516 = vpush %v319_v53 }
 0x13e   : > { %s517_s11 = spop %516 }
 0x13f   : > { %v321_v54 = vstv %s517_s11 }
 0x140   : > { %322 = vst [vmem:[%s258_s4] sm:$0xff] %v321_v54 }
 0x141   : > { %697 = shalt.err (!%p694_p1)
}
 0x142   : > { %s698_s23 = scalar_lea.hbm %s355_s21, 128  ;;  %s702_s9 = scalar_lea.hbm %s1012_s3, 256 }
 0x143   : > { %p699_p10 = scmp.ne.s32.totalorder %s355_s21, %s698_s23  ;;  %p703_p8 = scmp.lt.s32.totalorder %s355_s21, %s1012_s3 }
 0x144   : > { %p704_p0 = scmp.lt.s32.totalorder %s702_s9, %s698_s23 }
 0x145   : > { %p700_p13 = pnand %p699_p10, %p851_p9 }
 0x146   : > { %p705_p12 = por %p704_p0, %p703_p8 }
 0x147   : > { %p701_p3 = pneg %p700_p13 }
 0x149   : > { %p706_p2 = pnand %p705_p12, %p701_p3 }
 0x14b   : > { %709 = shalt.err (!%p706_p2)
}
 0x14c   : > { %523 = dma.vmem_to_hbm [thread:$0]  (%p851_p9), %s964_s5, 128, %s355_s21, %s329_s6  }
 0x14d PF: > { %s369_s24 = sand.u32 1, %s752_s12   ;;  %p1021_p5 = scmp.ge.s32.totalorder %s772_s17, 2 }
 0x14e   : > { %s370_s4 = scalar_lea.sflag [#allocation4], %s369_s24 }
 0x14f   : > { %p534_p6 = pnand %p1021_p5, %p858_p11 }
 0x151   : > { %p535_p4 = pneg %p534_p6 }
 0x153   : > { %743 = dma.done.wait (%p535_p4), %s370_s4, 32  }
 0x154   : > { %745 = vsyncadd (%p535_p4), %s370_s4, 4294967264  ;;  %s379_s7 = scalar_lea.sflag [#allocation9], %s369_s24 }
 0x155   : > { %747 = dma.done.wait (%p535_p4), %s379_s7, 128  }
 0x156   : > { %749 = vsyncadd (%p535_p4), %s379_s7, 4294967168  ;;  %s26_s17 = sadd.s32 1, %s772_s17   ;;  %s1022_s12 = smov %s756_s13 }
 0x157   : > { %p23_p7 = scmp.ge.s32.totalorder %s26_s17, 4   ;;  %s1023_s13 = smov %s760_s14 }
 0x158   : > { %s1024_s14 = smov %s856_s26  ;;  %s1025_s15 = smov %s768_s16 }
 0x159   : > { %s1026_s16 = smov %s1028_s20  ;;  %25 = sbr.rel (!%p23_p7) target bundleno = 12 (0xc), region = 103 }
 0x15e   :  { %384 = vsyncpa [#allocation3], 1 }
 0x15f   :  { %386 = vsyncpa [#allocation3 + $0x1], 1 }
 0x160   :  { %387 = vsyncpa [#allocation6], 1 }
 0x161   :  { %389 = vsyncpa [#allocation6 + $0x1], 1 }
 0x162   :  { %390 = vsyncpa [#allocation4], 1 }
 0x163   :  { %392 = vsyncpa [#allocation4 + $0x1], 1 }
 0x164   :  { %393 = vsyncpa [#allocation9], 1 }
 0x165   :  { %395 = vsyncpa [#allocation9 + $0x1], 1 }

</bundles_post_ra>
